<compile_context>
chip_gen: v5e
topology: v5e:2x2
jax: 0.10.0
libtpu: 0.0.40
codegen_flags: <defaults>
</compile_context>

<pallas_src>
import jax
import jax.numpy as jnp
import numpy as np
from jax import lax
from jax.experimental import pallas as pl
from jax.experimental.pallas import tpu as pltpu


# ------------------------------- MaxPool2d(2) --------------------------------
def _maxpool_kernel(p00_ref, p01_ref, p10_ref, p11_ref, o_ref):
    # Each ref is one (n, c) plane of one 2x2 phase: (1, 1, H2, W2).
    o_ref[...] = jnp.maximum(
        jnp.maximum(p00_ref[...], p01_ref[...]),
        jnp.maximum(p10_ref[...], p11_ref[...]),
    )


def maxpool2x2_to_cmajor(x_nchw):
    """MaxPool2d(2) on NCHW input; returns pooled activation in C-major layout
    (C, N, H/2, W/2) -- the layout the conv stage consumes (free via index_map)."""
    N, C, H, W = x_nchw.shape
    assert H % 2 == 0 and W % 2 == 0, "MaxPool2d(2) path assumes even H, W"
    H2, W2 = H // 2, W // 2
    # Four 2x2 phases as XLA strided slices (no transposes anywhere).
    phases = [x_nchw[:, :, dh::2, dw::2] for dh in (0, 1) for dw in (0, 1)]

    plane = pl.BlockSpec((1, 1, H2, W2), lambda n, c: (n, c, 0, 0))
    out_plane = pl.BlockSpec((1, 1, H2, W2), lambda n, c: (c, n, 0, 0))  # -> CNHW
    return pl.pallas_call(
        _maxpool_kernel,
        out_shape=jax.ShapeDtypeStruct((C, N, H2, W2), x_nchw.dtype),
        grid=(N, C),
        in_specs=[plane, plane, plane, plane],
        out_specs=out_plane,
        compiler_params=pltpu.CompilerParams(
            dimension_semantics=("parallel", "parallel")),
    )(*phases)


# ---------------- fused conv3x3 + BatchNorm(eval) + LeakyReLU ----------------
def _conv_bn_lrelu_kernel(xp_ref, w_ref, scale_ref, shift_ref, o_ref):
    # xp_ref   : (Kp, TM)    K-major im2col patch tile (Kp = 9*Cin rounded to 8)
    # w_ref    : (Cout, Kp)  folded conv weights (grid-invariant block)
    # scale/shift: (Cout, 1) conv-bias + eval-BatchNorm folded per-channel affine
    # o_ref    : (Cout, TM)  lane-dense output tile (large M dim on lanes)
    acc = jnp.dot(w_ref[...], xp_ref[...], preferred_element_type=jnp.float32)
    y = acc * scale_ref[...] + shift_ref[...]
    o_ref[...] = jnp.maximum(y, 0.01 * y)        # LeakyReLU(negative_slope=0.01)


def conv3x3_bn_lrelu_cmajor(y_cnhw, w_oihw, bias, gamma, beta, rmean, rvar,
                            *, eps=1e-5, block_m=256,
                            compute_dtype=jnp.float32):
    """3x3 SAME conv + eval BatchNorm + LeakyReLU on a C-major activation:
    (Cin, N, H, W) -> (Cout, N, H, W)."""
    Cin, N, H, W = y_cnhw.shape
    Cout = w_oihw.shape[0]
    M = N * H * W
    K = 9 * Cin
    Kp = ((K + 7) // 8) * 8                          # sublane-align contraction dim
    TM = min(block_m, ((M + 127) // 128) * 128)      # lane tile (multiple of 128)
    Mp = ((M + TM - 1) // TM) * TM

    # K-major im2col (9*Cin, M); no transpose needed from the C-major layout.
    ypad = jnp.pad(y_cnhw, ((0, 0), (0, 0), (1, 1), (1, 1)))
    patches = jnp.stack([ypad[:, :, dh:dh + H, dw:dw + W]
                         for dh in range(3) for dw in range(3)])   # (9, Cin, N, H, W)
    patches = patches.reshape(K, M)
    patches = jnp.pad(patches, ((0, Kp - K), (0, Mp - M)))

    # Weights (Cout, Cin, 3, 3) -> (Cout, 9*Cin) matching the (tap, cin) K order.
    w_k = jnp.transpose(w_oihw, (0, 2, 3, 1)).reshape(Cout, K)
    w_k = jnp.pad(w_k, ((0, 0), (0, Kp - K)))

    # Fold conv bias + eval-mode BatchNorm into one per-channel affine.
    scale = gamma / jnp.sqrt(rvar + eps)             # (Cout,)
    shift = (bias - rmean) * scale + beta            # (Cout,)

    patches = patches.astype(compute_dtype)          # bf16 MXU operands on v6e/v7x
    w_k = w_k.astype(compute_dtype)

    out = pl.pallas_call(
        _conv_bn_lrelu_kernel,
        out_shape=jax.ShapeDtypeStruct((Cout, Mp), jnp.float32),
        grid=(Mp // TM,),
        in_specs=[
            pl.BlockSpec((Kp, TM), lambda i: (0, i)),     # patch tile (pipelined)
            pl.BlockSpec((Cout, Kp), lambda i: (0, 0)),   # weights (grid-invariant)
            pl.BlockSpec((Cout, 1), lambda i: (0, 0)),    # scale
            pl.BlockSpec((Cout, 1), lambda i: (0, 0)),    # shift
        ],
        out_specs=pl.BlockSpec((Cout, TM), lambda i: (0, i)),
        compiler_params=pltpu.CompilerParams(
            dimension_semantics=("parallel",),            # shard M tiles across TCs
            vmem_limit_bytes=32 * 1024 * 1024,            # tiles sized far below this
        ),
    )(patches, w_k, scale.reshape(Cout, 1), shift.reshape(Cout, 1))
    return out[:, :M].reshape(Cout, N, H, W)


# --------------------------------- DownBlock ---------------------------------
def down_block_forward(x_nchw, p, *, compute_dtype=jnp.float32):
    h = maxpool2x2_to_cmajor(x_nchw)                                  # (Cin, N, H2, W2)
    h = conv3x3_bn_lrelu_cmajor(h, p["w1"], p["b1"], p["g1"], p["be1"],
                                p["m1"], p["v1"], compute_dtype=compute_dtype)
    # TODO(synk): nn.Dropout is the identity in eval mode; train-mode RNG masking
    # (pltpu.prng_random_bits + mask) is not implemented here.
    h = conv3x3_bn_lrelu_cmajor(h, p["w2"], p["b2"], p["g2"], p["be2"],
                                p["m2"], p["v2"], compute_dtype=compute_dtype)
    return jnp.transpose(h, (1, 0, 2, 3))                             # back to NCHW


# ---------------------------- pure-JAX reference ----------------------------
def down_block_reference(x, p, eps=1e-5):
    h = lax.reduce_window(x, -jnp.inf, lax.max, (1, 1, 2, 2), (1, 1, 2, 2), "VALID")

    def block(h, w, b, g, be, m, v):
        y = lax.conv_general_dilated(h, w, (1, 1), "SAME",
                                     dimension_numbers=("NCHW", "OIHW", "NCHW"))
        y = y + b[None, :, None, None]
        y = (y - m[None, :, None, None]) / jnp.sqrt(v + eps)[None, :, None, None]
        y = y * g[None, :, None, None] + be[None, :, None, None]
        return jnp.where(y > 0, y, 0.01 * y)

    h = block(h, p["w1"], p["b1"], p["g1"], p["be1"], p["m1"], p["v1"])
    h = block(h, p["w2"], p["b2"], p["g2"], p["be2"], p["m2"], p["v2"])
    return h


if __name__ == "__main__":
    key = jax.random.PRNGKey(0)
    in_ch, out_ch = 4, 8
    N, H, W = 2, 32, 32            # small, even spatial; pooled M = 512 -> 2 conv tiles
    ks = jax.random.split(key, 13)

    p = {
        "w1": jax.random.normal(ks[0], (out_ch, in_ch, 3, 3), jnp.float32) * 0.2,
        "b1": jax.random.normal(ks[1], (out_ch,), jnp.float32) * 0.1,
        "g1": jax.random.uniform(ks[2], (out_ch,), jnp.float32, 0.5, 1.5),
        "be1": jax.random.normal(ks[3], (out_ch,), jnp.float32) * 0.1,
        "m1": jax.random.normal(ks[4], (out_ch,), jnp.float32) * 0.1,
        "v1": jax.random.uniform(ks[5], (out_ch,), jnp.float32, 0.5, 1.5),
        "w2": jax.random.normal(ks[6], (out_ch, out_ch, 3, 3), jnp.float32) * 0.2,
        "b2": jax.random.normal(ks[7], (out_ch,), jnp.float32) * 0.1,
        "g2": jax.random.uniform(ks[8], (out_ch,), jnp.float32, 0.5, 1.5),
        "be2": jax.random.normal(ks[9], (out_ch,), jnp.float32) * 0.1,
        "m2": jax.random.normal(ks[10], (out_ch,), jnp.float32) * 0.1,
        "v2": jax.random.uniform(ks[11], (out_ch,), jnp.float32, 0.5, 1.5),
    }
    x = jax.random.normal(ks[12], (N, in_ch, H, W), jnp.float32)

    # f32 path (reference-exact semantics).
    fwd = jax.jit(down_block_forward)
    out = jax.block_until_ready(fwd(x, p))
    assert out.shape == (N, out_ch, H // 2, W // 2), out.shape

    ref = jax.block_until_ready(down_block_reference(x, p))
    np.testing.assert_allclose(np.asarray(out), np.asarray(ref), rtol=1e-4, atol=1e-4)

    # bf16 MXU-operand path (v6e/v7x recommendation): f32 accumulate + f32 epilogue.
    fwd_bf16 = jax.jit(lambda xx, pp: down_block_forward(xx, pp,
                                                         compute_dtype=jnp.bfloat16))
    out_bf16 = jax.block_until_ready(fwd_bf16(x, p))
    np.testing.assert_allclose(np.asarray(out_bf16), np.asarray(ref),
                               rtol=0.1, atol=0.2)

    print("KERNEL_OK")
</pallas_src>

<mosaic_0001>
module attributes {stable_mosaic.version = 11 : i64} {
  func.func @_maxpool_kernel(%arg0: i32, %arg1: i32, %arg2: memref<1x1x16x16xf32, #tpu.memory_space<vmem>>, %arg3: memref<1x1x16x16xf32, #tpu.memory_space<vmem>>, %arg4: memref<1x1x16x16xf32, #tpu.memory_space<vmem>>, %arg5: memref<1x1x16x16xf32, #tpu.memory_space<vmem>>, %arg6: memref<1x1x16x16xf32, #tpu.memory_space<vmem>>) attributes {dimension_semantics = [#tpu.dimension_semantics<parallel>, #tpu.dimension_semantics<parallel>], iteration_bounds = array<i64: 2, 4>, scalar_prefetch = 0 : i64, scratch_operands = 0 : i64, tpu.core_type = #tpu.core_type<tc>, window_params = [{transform_indices = @transform_0, window_bounds = array<i64: 1, 1, 16, 16>}, {transform_indices = @transform_1, window_bounds = array<i64: 1, 1, 16, 16>}, {transform_indices = @transform_2, window_bounds = array<i64: 1, 1, 16, 16>}, {transform_indices = @transform_3, window_bounds = array<i64: 1, 1, 16, 16>}, {transform_indices = @transform_4, window_bounds = array<i64: 1, 1, 16, 16>}]} {
    %c0 = arith.constant 0 : index
    %c0_0 = arith.constant 0 : index
    %c0_1 = arith.constant 0 : index
    %c0_2 = arith.constant 0 : index
    %0 = vector.load %arg2[%c0, %c0_0, %c0_1, %c0_2] : memref<1x1x16x16xf32, #tpu.memory_space<vmem>>, vector<1x1x16x16xf32>
    %c0_3 = arith.constant 0 : index
    %c0_4 = arith.constant 0 : index
    %c0_5 = arith.constant 0 : index
    %c0_6 = arith.constant 0 : index
    %1 = vector.load %arg3[%c0_3, %c0_4, %c0_5, %c0_6] : memref<1x1x16x16xf32, #tpu.memory_space<vmem>>, vector<1x1x16x16xf32>
    %2 = arith.maximumf %0, %1 : vector<1x1x16x16xf32>
    %c0_7 = arith.constant 0 : index
    %c0_8 = arith.constant 0 : index
    %c0_9 = arith.constant 0 : index
    %c0_10 = arith.constant 0 : index
    %3 = vector.load %arg4[%c0_7, %c0_8, %c0_9, %c0_10] : memref<1x1x16x16xf32, #tpu.memory_space<vmem>>, vector<1x1x16x16xf32>
    %c0_11 = arith.constant 0 : index
    %c0_12 = arith.constant 0 : index
    %c0_13 = arith.constant 0 : index
    %c0_14 = arith.constant 0 : index
    %4 = vector.load %arg5[%c0_11, %c0_12, %c0_13, %c0_14] : memref<1x1x16x16xf32, #tpu.memory_space<vmem>>, vector<1x1x16x16xf32>
    %5 = arith.maximumf %3, %4 : vector<1x1x16x16xf32>
    %6 = arith.maximumf %2, %5 : vector<1x1x16x16xf32>
    %c0_15 = arith.constant 0 : index
    %c0_16 = arith.constant 0 : index
    %c0_17 = arith.constant 0 : index
    %c0_18 = arith.constant 0 : index
    %7 = vector.load %arg6[%c0_15, %c0_16, %c0_17, %c0_18] : memref<1x1x16x16xf32, #tpu.memory_space<vmem>>, vector<1x1x16x16xf32>
    tpu.vector_store %arg6[%c0_15, %c0_16, %c0_17, %c0_18], %6 {strides = array<i32>} : memref<1x1x16x16xf32, #tpu.memory_space<vmem>>, vector<1x1x16x16xf32>,
    return
  }
  func.func @transform_0(%arg0: i32, %arg1: i32) -> (i32, i32, i32, i32) {
    %c0_i32 = arith.constant 0 : i32
    %c0_i32_0 = arith.constant 0 : i32
    %c0_i32_1 = arith.constant 0 : i32
    return %arg0, %arg1, %c0_i32, %c0_i32_0 : i32, i32, i32, i32
  }
  func.func @transform_1(%arg0: i32, %arg1: i32) -> (i32, i32, i32, i32) {
    %c0_i32 = arith.constant 0 : i32
    %c0_i32_0 = arith.constant 0 : i32
    %c0_i32_1 = arith.constant 0 : i32
    return %arg0, %arg1, %c0_i32, %c0_i32_0 : i32, i32, i32, i32
  }
  func.func @transform_2(%arg0: i32, %arg1: i32) -> (i32, i32, i32, i32) {
    %c0_i32 = arith.constant 0 : i32
    %c0_i32_0 = arith.constant 0 : i32
    %c0_i32_1 = arith.constant 0 : i32
    return %arg0, %arg1, %c0_i32, %c0_i32_0 : i32, i32, i32, i32
  }
  func.func @transform_3(%arg0: i32, %arg1: i32) -> (i32, i32, i32, i32) {
    %c0_i32 = arith.constant 0 : i32
    %c0_i32_0 = arith.constant 0 : i32
    %c0_i32_1 = arith.constant 0 : i32
    return %arg0, %arg1, %c0_i32, %c0_i32_0 : i32, i32, i32, i32
  }
  func.func @transform_4(%arg0: i32, %arg1: i32) -> (i32, i32, i32, i32) {
    %c0_i32 = arith.constant 0 : i32
    %c0_i32_0 = arith.constant 0 : i32
    %c0_i32_1 = arith.constant 0 : i32
    return %arg1, %arg0, %c0_i32, %c0_i32_0 : i32, i32, i32, i32
  }
}

module attributes {stable_mosaic.version = 11 : i64} {
  func.func @_conv_bn_lrelu_kernel(%arg0: i32, %arg1: memref<40x256xf32, #tpu.memory_space<vmem>>, %arg2: memref<8x40xf32, #tpu.memory_space<vmem>>, %arg3: memref<8x1xf32, #tpu.memory_space<vmem>>, %arg4: memref<8x1xf32, #tpu.memory_space<vmem>>, %arg5: memref<8x256xf32, #tpu.memory_space<vmem>>) attributes {dimension_semantics = [#tpu.dimension_semantics<parallel>], iteration_bounds = array<i64: 2>, scalar_prefetch = 0 : i64, scratch_operands = 0 : i64, tpu.core_type = #tpu.core_type<tc>, window_params = [{transform_indices = @transform_0, window_bounds = array<i64: 40, 256>}, {pipeline_mode = #tpu.pipeline_mode<synchronous>, transform_indices = @transform_1, window_bounds = array<i64: 8, 40>}, {pipeline_mode = #tpu.pipeline_mode<synchronous>, transform_indices = @transform_2, window_bounds = array<i64: 8, 1>}, {pipeline_mode = #tpu.pipeline_mode<synchronous>, transform_indices = @transform_3, window_bounds = array<i64: 8, 1>}, {transform_indices = @transform_4, window_bounds = array<i64: 8, 256>}]} {
    %c0 = arith.constant 0 : index
    %c0_0 = arith.constant 0 : index
    %0 = vector.load %arg2[%c0, %c0_0] : memref<8x40xf32, #tpu.memory_space<vmem>>, vector<8x40xf32>
    %c0_1 = arith.constant 0 : index
    %c0_2 = arith.constant 0 : index
    %1 = vector.load %arg1[%c0_1, %c0_2] : memref<40x256xf32, #tpu.memory_space<vmem>>, vector<40x256xf32>
    %cst = arith.constant dense<0.000000e+00> : vector<8x256xf32>
    %2 = tpu.matmul %0, %1, %cst {dimension_numbers = #tpu.dot_dimension_numbers<[1], [0], [0], [1], [0, 0, 1, 1], [], []>} : vector<8x40xf32>, vector<40x256xf32>, vector<8x256xf32> -> vector<8x256xf32>
    %c0_3 = arith.constant 0 : index
    %c0_4 = arith.constant 0 : index
    %3 = vector.load %arg3[%c0_3, %c0_4] : memref<8x1xf32, #tpu.memory_space<vmem>>, vector<8x1xf32>
    %4 = vector.broadcast %3 : vector<8x1xf32> to vector<8x256xf32>
    %5 = arith.mulf %2, %4 : vector<8x256xf32>
    %c0_5 = arith.constant 0 : index
    %c0_6 = arith.constant 0 : index
    %6 = vector.load %arg4[%c0_5, %c0_6] : memref<8x1xf32, #tpu.memory_space<vmem>>, vector<8x1xf32>
    %7 = vector.broadcast %6 : vector<8x1xf32> to vector<8x256xf32>
    %8 = arith.addf %5, %7 : vector<8x256xf32>
    %cst_7 = arith.constant 0.00999999977 : f32
    %9 = vector.broadcast %cst_7 : f32 to vector<8x256xf32>
    %10 = arith.mulf %9, %8 : vector<8x256xf32>
    %11 = arith.maximumf %8, %10 : vector<8x256xf32>
    %c0_8 = arith.constant 0 : index
    %c0_9 = arith.constant 0 : index
    %12 = vector.load %arg5[%c0_8, %c0_9] : memref<8x256xf32, #tpu.memory_space<vmem>>, vector<8x256xf32>
    tpu.vector_store %arg5[%c0_8, %c0_9], %11 {strides = array<i32>} : memref<8x256xf32, #tpu.memory_space<vmem>>, vector<8x256xf32>,
    return
  }
  func.func @transform_0(%arg0: i32) -> (i32, i32) {
    %c0_i32 = arith.constant 0 : i32
    %c0_i32_0 = arith.constant 0 : i32
    return %c0_i32, %arg0 : i32, i32
  }
  func.func @transform_1(%arg0: i32) -> (i32, i32) {
    %c0_i32 = arith.constant 0 : i32
    %c0_i32_0 = arith.constant 0 : i32
    %c0_i32_1 = arith.constant 0 : i32
    return %c0_i32, %c0_i32_0 : i32, i32
  }
  func.func @transform_2(%arg0: i32) -> (i32, i32) {
    %c0_i32 = arith.constant 0 : i32
    %c0_i32_0 = arith.constant 0 : i32
    %c0_i32_1 = arith.constant 0 : i32
    return %c0_i32, %c0_i32_0 : i32, i32
  }
  func.func @transform_3(%arg0: i32) -> (i32, i32) {
    %c0_i32 = arith.constant 0 : i32
    %c0_i32_0 = arith.constant 0 : i32
    %c0_i32_1 = arith.constant 0 : i32
    return %c0_i32, %c0_i32_0 : i32, i32
  }
  func.func @transform_4(%arg0: i32) -> (i32, i32) {
    %c0_i32 = arith.constant 0 : i32
    %c0_i32_0 = arith.constant 0 : i32
    return %c0_i32, %arg0 : i32, i32
  }
}

module attributes {stable_mosaic.version = 11 : i64} {
  func.func @_conv_bn_lrelu_kernel(%arg0: i32, %arg1: memref<72x256xf32, #tpu.memory_space<vmem>>, %arg2: memref<8x72xf32, #tpu.memory_space<vmem>>, %arg3: memref<8x1xf32, #tpu.memory_space<vmem>>, %arg4: memref<8x1xf32, #tpu.memory_space<vmem>>, %arg5: memref<8x256xf32, #tpu.memory_space<vmem>>) attributes {dimension_semantics = [#tpu.dimension_semantics<parallel>], iteration_bounds = array<i64: 2>, scalar_prefetch = 0 : i64, scratch_operands = 0 : i64, tpu.core_type = #tpu.core_type<tc>, window_params = [{transform_indices = @transform_0, window_bounds = array<i64: 72, 256>}, {pipeline_mode = #tpu.pipeline_mode<synchronous>, transform_indices = @transform_1, window_bounds = array<i64: 8, 72>}, {pipeline_mode = #tpu.pipeline_mode<synchronous>, transform_indices = @transform_2, window_bounds = array<i64: 8, 1>}, {pipeline_mode = #tpu.pipeline_mode<synchronous>, transform_indices = @transform_3, window_bounds = array<i64: 8, 1>}, {transform_indices = @transform_4, window_bounds = array<i64: 8, 256>}]} {
    %c0 = arith.constant 0 : index
    %c0_0 = arith.constant 0 : index
    %0 = vector.load %arg2[%c0, %c0_0] : memref<8x72xf32, #tpu.memory_space<vmem>>, vector<8x72xf32>
    %c0_1 = arith.constant 0 : index
    %c0_2 = arith.constant 0 : index
    %1 = vector.load %arg1[%c0_1, %c0_2] : memref<72x256xf32, #tpu.memory_space<vmem>>, vector<72x256xf32>
    %cst = arith.constant dense<0.000000e+00> : vector<8x256xf32>
    %2 = tpu.matmul %0, %1, %cst {dimension_numbers = #tpu.dot_dimension_numbers<[1], [0], [0], [1], [0, 0, 1, 1], [], []>} : vector<8x72xf32>, vector<72x256xf32>, vector<8x256xf32> -> vector<8x256xf32>
    %c0_3 = arith.constant 0 : index
    %c0_4 = arith.constant 0 : index
    %3 = vector.load %arg3[%c0_3, %c0_4] : memref<8x1xf32, #tpu.memory_space<vmem>>, vector<8x1xf32>
    %4 = vector.broadcast %3 : vector<8x1xf32> to vector<8x256xf32>
    %5 = arith.mulf %2, %4 : vector<8x256xf32>
    %c0_5 = arith.constant 0 : index
    %c0_6 = arith.constant 0 : index
    %6 = vector.load %arg4[%c0_5, %c0_6] : memref<8x1xf32, #tpu.memory_space<vmem>>, vector<8x1xf32>
    %7 = vector.broadcast %6 : vector<8x1xf32> to vector<8x256xf32>
    %8 = arith.addf %5, %7 : vector<8x256xf32>
    %cst_7 = arith.constant 0.00999999977 : f32
    %9 = vector.broadcast %cst_7 : f32 to vector<8x256xf32>
    %10 = arith.mulf %9, %8 : vector<8x256xf32>
    %11 = arith.maximumf %8, %10 : vector<8x256xf32>
    %c0_8 = arith.constant 0 : index
    %c0_9 = arith.constant 0 : index
    %12 = vector.load %arg5[%c0_8, %c0_9] : memref<8x256xf32, #tpu.memory_space<vmem>>, vector<8x256xf32>
    tpu.vector_store %arg5[%c0_8, %c0_9], %11 {strides = array<i32>} : memref<8x256xf32, #tpu.memory_space<vmem>>, vector<8x256xf32>,
    return
  }
  func.func @transform_0(%arg0: i32) -> (i32, i32) {
    %c0_i32 = arith.constant 0 : i32
    %c0_i32_0 = arith.constant 0 : i32
    return %c0_i32, %arg0 : i32, i32
  }
  func.func @transform_1(%arg0: i32) -> (i32, i32) {
    %c0_i32 = arith.constant 0 : i32
    %c0_i32_0 = arith.constant 0 : i32
    %c0_i32_1 = arith.constant 0 : i32
    return %c0_i32, %c0_i32_0 : i32, i32
  }
  func.func @transform_2(%arg0: i32) -> (i32, i32) {
    %c0_i32 = arith.constant 0 : i32
    %c0_i32_0 = arith.constant 0 : i32
    %c0_i32_1 = arith.constant 0 : i32
    return %c0_i32, %c0_i32_0 : i32, i32
  }
  func.func @transform_3(%arg0: i32) -> (i32, i32) {
    %c0_i32 = arith.constant 0 : i32
    %c0_i32_0 = arith.constant 0 : i32
    %c0_i32_1 = arith.constant 0 : i32
    return %c0_i32, %c0_i32_0 : i32, i32
  }
  func.func @transform_4(%arg0: i32) -> (i32, i32) {
    %c0_i32 = arith.constant 0 : i32
    %c0_i32_0 = arith.constant 0 : i32
    return %c0_i32, %arg0 : i32, i32
  }
}

</mosaic_0001>

<bundles_post_ra>
// kernel: down_block_forward.3
= control target key start
LH: loop header
LB: loop body
LE: loop exit
PB: predicated region body
PF: predicated region fallthrough
CT: control target
= control target key end

     0   :  { %s638_s15 = smov 0   ;;  %s640_s16 = smov 0   ;;  %s698_s0 = inlined_call_operand.vmem [shape: f32[2,4,16,16], index: 0, kind: input, shape index: {}]   ;;  %s699_s1 = inlined_call_operand.vmem [shape: f32[2,4,16,16], index: 1, kind: input, shape index: {}]   ;;  %s700_s2 = inlined_call_operand.vmem [shape: f32[2,4,16,16], index: 2, kind: input, shape index: {}]   ;;  %s701_s3 = inlined_call_operand.vmem [shape: f32[2,4,16,16], index: 3, kind: input, shape index: {}]   ;;  %s702_s4 = inlined_call_operand.vmem [shape: f32[4,2,16,16], index: 4, kind: output, shape index: {}]  }
   0x1   :  { %s642_s17 = smov 0   ;;  %s644_s18 = smov 0  }
   0x2   :  { %s646_s19 = smov 0  }
   0x3 LB: > { %s23_s20 = sadd.s32 1, %s603_s17  ;;  %s26_s21 = sadd.s32 1, %s607_s18  ;;  %s611_s19 = sphi %s646_s19, %s14_s19   ;;  %s607_s18 = sphi %s644_s18, %s706_s18   ;;  %s603_s17 = sphi %s642_s17, %s705_s17   ;;  %s599_s16 = sphi %s640_s16, %s704_s16   ;;  %s595_s15 = sphi %s638_s15, %s703_s15  }
   0x4   : > { %p24_p0 = scmp.ge.s32.totalorder %s23_s20, 4  ;;  %p515_p1 = scmp.ge.s32.totalorder %s611_s19, 1 }
   0x5   : > { %p230_p2 = scmp.lt.s32.totalorder %s611_s19, 9 }
   0x6   : > { %s708_s20 = smov (%p24_p0, %s23_s20), 0  ;;  %s710_s21 = smov (!%p24_p0, %s26_s21), %s607_s18 }
   0x7   : > { %p231_p3 = pnand %p515_p1, %p230_p2  ;;  %p28_p4 = scmp.ge.s32.totalorder %s710_s21, 2 }
   0x8   : > { %p291_p5 = scmp.lt.s32.totalorder (!%p231_p3), %s599_s16, 1  ;;  %p293_p6 = scmp.lt.s32.totalorder (!%p231_p3), %s595_s15, 3 }
   0x9   : > { %s712_s21 = smov (%p28_p4, %s710_s21), 0  ;;  %234 = sbr.rel (%p231_p3) target bundleno = 30 (0x1e), region = 36 }
   0xe   : > { %s714_s16 = smov (!%p291_p5, %s599_s16), 1  ;;  %s716_s15 = smov (!%p293_p6, %s595_s15), 3  ;;  %vm350_vm0 = vcmask 130048  }
   0xf   : > { %s517_s22 = sshll.u32 %s714_s16, 3  ;;  %s528_s23 = sshll.u32 %s714_s16, 1 }
  0x10   : > { %s516_s24 = sshll.u32 %s716_s15, 1  ;;  %s529_s25 = sshll.u32 %s716_s15, 2 }
  0x11   : > { %s297_s26 = sadd.s32 %s517_s22, %s516_s24  ;;  %s333_s27 = sadd.s32 %s529_s25, %s528_s23 }
  0x12   : > { %s518_s28 = sshll.u32 %s297_s26, 3  ;;  %s530_s29 = sshll.u32 %s333_s27, 3 }
  0x13   : > { %s299_s6 = scalar_lea.vmem %s698_s0, %s518_s28  ;;  %s308_s9 = scalar_lea.vmem %s699_s1, %s518_s28 }
  0x14   : > { %s317_s12 = scalar_lea.vmem %s700_s2, %s518_s28  ;;  %s326_s15 = scalar_lea.vmem %s701_s3, %s518_s28  ;;  %v336_v0 = vld [vmem:[%s299_s6] sm:$0xff]  ;;  %v337_v2 = vld [vmem:[%s299_s6 + $0x8] sm:$0xff] }
  0x15   : > { %v338_v1 = vld [vmem:[%s308_s9] sm:$0xff]  ;;  %v339_v6 = vld [vmem:[%s308_s9 + $0x8] sm:$0xff]  ;;  %s335_s23 = scalar_lea.vmem %s702_s4, %s530_s29 }
  0x16   : > { %v340_v3 = vmax.f32 %v336_v0, %v338_v1  ;;  %v342_v4 = vld [vmem:[%s317_s12] sm:$0xff]  ;;  %v341_v8 = vmax.f32 %v337_v2, %v339_v6  ;;  %v343_v9 = vld [vmem:[%s317_s12 + $0x8] sm:$0xff] }
  0x17   : > { %v344_v5 = vld [vmem:[%s326_s15] sm:$0xff]  ;;  %v345_v10 = vld [vmem:[%s326_s15 + $0x8] sm:$0xff] }
  0x18   : > { %v346_v7 = vmax.f32 %v342_v4, %v344_v5  ;;  %v347_v11 = vmax.f32 %v343_v9, %v345_v10 }
  0x1a   : > { %v348_v12 = vmax.f32 %v340_v3, %v346_v7  ;;  %v349_v13 = vmax.f32 %v341_v8, %v347_v11 }
  0x1c   : > { %351 = vst.msk [vmem:[%s335_s23] sm:$0xff] %vm350_vm0, %v348_v12 }
  0x1d   : > { %352 = vst.msk [vmem:[%s335_s23 + $0x8] sm:$0xff] %vm350_vm0, %v349_v13 }
  0x1e PF: > { %s14_s19 = sadd.s32 1, %s611_s19   ;;  %s703_s15 = smov %s603_s17 }
  0x1f   : > { %p11_p7 = scmp.ge.s32.totalorder %s14_s19, 10   ;;  %s704_s16 = smov %s607_s18 }
  0x20   : > { %s705_s17 = smov %s708_s20  ;;  %s706_s18 = smov %s712_s21 }
  0x21   :  { %13 = sbr.rel (!%p11_p7) target bundleno = 3 (0x3), region = 75 }

// kernel: down_block_forward.4
= control target key start
LH: loop header
LB: loop body
LE: loop exit
PB: predicated region body
PF: predicated region fallthrough
CT: control target
= control target key end

     0   :  { %s469_s15 = smov 0   ;;  %s471_s16 = smov 0   ;;  %s530_s0 = inlined_call_operand.vmem [shape: f32[40,512], index: 0, kind: input, shape index: {}]   ;;  %s531_s1 = inlined_call_operand.vmem [shape: f32[8,40], index: 1, kind: input, shape index: {}]   ;;  %s532_s2 = inlined_call_operand.vmem [shape: f32[8,1], index: 2, kind: input, shape index: {}]   ;;  %s533_s3 = inlined_call_operand.vmem [shape: f32[8,1], index: 3, kind: input, shape index: {}]   ;;  %s534_s4 = inlined_call_operand.vmem [shape: f32[8,512], index: 4, kind: output, shape index: {}]  }
   0x1   :  { %s473_s17 = smov 0  }
   0x2 LB: > { %s377_s18 = sadd.s32 4294967295, %s441_s17   ;;  %s486_s19 = sadd.s32 1, %s441_s17   ;;  %s441_s17 = sphi %s473_s17, %s537_s17   ;;  %s437_s16 = sphi %s471_s16, %s536_s16   ;;  %s433_s15 = sphi %s469_s15, %s535_s15  }
   0x3   : > { %s18_s20 = ssub.s32 %s441_s17, %s486_s19  ;;  %s21_s21 = sadd.s32 1, %s437_s16 }
   0x4   : > { %p19_p0 = scmp.eq.s32.totalorder %s18_s20, 0  ;;  %p28_p1 = scmp.ne.s32.totalorder %s437_s16, %s433_s15 }
   0x5   : > { %p29_p2 = scmp.eq.s32.totalorder %s441_s17, 0  ;;  %p380_p4 = scmp.ge.s32.totalorder %s441_s17, 2 }
   0x6   : > { %s495_s22 = scalar_select %p19_p0, %s437_s16, %s21_s21  }
   0x7   : > { %p30_p3 = por %p29_p2, %p28_p1  ;;  %152 = sbr.rel (%p380_p4) target bundleno = 26 (0x1a), region = 28 }
   0xc   : > { %155 = sbr.rel (!%p30_p3) target bundleno = 26 (0x1a), region = 32  ;;  %s157_s23 = sand.u32 (%p30_p3), 1, %s437_s16  }
   0xd   : > { %s390_s24 = sshll.u32 (%p30_p3), %s441_s17, 4  ;;  %s391_s25 = smul.u32 (%p30_p3), 80, %s157_s23 }
   0xe   : > { %s162_s28 = scalar_lea.vmem (%p30_p3), %s530_s0, %s390_s24 }
   0xf   : > { %v175_v0 = vld [vmem:[%s162_s28] sm:$0xff] (%p30_p3)  ;;  %v177_v1 = vld [vmem:[%s162_s28 + $0x8] sm:$0xff] (%p30_p3)  ;;  %s159_s29 = scalar_lea.vmem (%p30_p3), [#allocation2], %s391_s25 }
  0x10   : > { %v179_v2 = vld [vmem:[%s162_s28 + $0x20] sm:$0xff] (%p30_p3)  ;;  %176 = vst [vmem:[%s159_s29] sm:$0xff] (%p30_p3), %v175_v0  ;;  %v181_v3 = vld [vmem:[%s162_s28 + $0x28] sm:$0xff] (%p30_p3) }
  0x11   : > { %178 = vst [vmem:[%s159_s29 + $0x8] sm:$0xff] %v177_v1  ;;  %v183_v4 = vld [vmem:[%s162_s28 + $0x40] sm:$0xff]  ;;  %v185_v5 = vld [vmem:[%s162_s28 + $0x48] sm:$0xff] }
  0x12   : > { %180 = vst [vmem:[%s159_s29 + $0x10] sm:$0xff] %v179_v2  ;;  %v187_v6 = vld [vmem:[%s162_s28 + $0x60] sm:$0xff]  ;;  %v189_v7 = vld [vmem:[%s162_s28 + $0x68] sm:$0xff] }
  0x13   : > { %182 = vst [vmem:[%s159_s29 + $0x18] sm:$0xff] %v181_v3  ;;  %v191_v8 = vld [vmem:[%s162_s28 + $0x80] sm:$0xff]  ;;  %v193_v9 = vld [vmem:[%s162_s28 + $0x88] sm:$0xff] }
  0x14   : > { %184 = vst [vmem:[%s159_s29 + $0x20] sm:$0xff] %v183_v4 }
  0x15   : > { %186 = vst [vmem:[%s159_s29 + $0x28] sm:$0xff] %v185_v5 }
  0x16   : > { %188 = vst [vmem:[%s159_s29 + $0x30] sm:$0xff] %v187_v6 }
  0x17   : > { %190 = vst [vmem:[%s159_s29 + $0x38] sm:$0xff] %v189_v7 }
  0x18   : > { %192 = vst [vmem:[%s159_s29 + $0x40] sm:$0xff] %v191_v8 }
  0x19   : > { %194 = vst [vmem:[%s159_s29 + $0x48] sm:$0xff] %v193_v9 }
  0x1a PF: > { %p383_p5 = scmp.ge.s32.totalorder %s441_s17, 1  ;;  %p199_p6 = scmp.lt.s32.totalorder %s441_s17, 3 }
  0x1c   : > { %p200_p7 = pnand %p383_p5, %p199_p6 }
  0x1d   : > { %s206_s30 = sand.u32 (!%p200_p7), 1, %s433_s15   ;;  %s384_s13 = sshll.u32 (!%p200_p7), %s377_s18, 1 }
  0x1e   : > { %203 = sbr.rel (%p200_p7) target bundleno = 182 (0xb6), region = 55  ;;  %p233_p8 = scmp.lt.s32.totalorder (!%p200_p7), %s384_s13, 3 }
  0x1f   : > { %s392_s7 = smul.u32 (!%p200_p7), 80, %s206_s30 }
  0x21   : > { %s208_s8 = scalar_lea.vmem (!%p200_p7), [#allocation2], %s392_s7 }
  0x23   : > { %v293_v10 = vld [vmem:[%s532_s2] sm:$0xff]  ;;  %v443_v11 = vmov 0   ;;  %v248_v13 = vld [vmem:[%s208_s8 + $0x48] sm:$0xff]  ;;  %v246_v15 = vld [vmem:[%s208_s8 + $0x38] sm:$0xff]  ;;  %vm249_vm0 = vcmask 326656   ;;  %s539_s13 = smov (!%p233_p8, %s384_s13), 3 }
  0x24   : > { %418 = vset.pattern.permute.xlu0 %v443_v11  ;;  %v247_v12 = vld [vmem:[%s208_s8 + $0x40] sm:$0xff]  ;;  %v245_v14 = vld [vmem:[%s208_s8 + $0x30] sm:$0xff]  ;;  %284 = vmatpush.msra.mxu1 %v248_v13  ;;  %v244_v17 = vld [vmem:[%s208_s8 + $0x28] sm:$0xff]  ;;  %s385_s14 = sshll.u32 %s539_s13, 3 }
  0x25   : > { %296 = vperm.xlu0 %418, %v293_v10   ;;  %264 = vmatpush.msra.mxu0 %v247_v12  ;;  %v243_v16 = vld [vmem:[%s208_s8 + $0x20] sm:$0xff]  ;;  %v241_v19 = vld [vmem:[%s208_s8 + $0x10] sm:$0xff]  ;;  %v242_v20 = vld [vmem:[%s208_s8 + $0x18] sm:$0xff]  ;;  %s236_s21 = scalar_lea.vmem %s534_s4, %s385_s14 }
  0x26   : > { %285 = vmatpush.msra.mxu1 %v246_v15  ;;  %v301_v18 = vld [vmem:[%s533_s3] sm:$0xff]  ;;  %v240_v22 = vld [vmem:[%s208_s8 + $0x8] sm:$0xff] }
  0x27   : > { %265 = vmatpush.msra.mxu0 %v245_v14  ;;  %v239_v21 = vld [vmem:[%s208_s8] sm:$0xff] }
  0x28   : > { %286 = vmatpush.msra.mxu1 %v244_v17  ;;  %v238_v23 = vld [vmem:[%s531_s1] sm:$0xff] }
  0x29   : > { %266 = vmatpush.msra.mxu0 %v243_v16 }
  0x2a   : > { %287 = vmatpush.msra.mxu1 %v242_v20 }
  0x2b   : > { %267 = vmatpush.msra.mxu0 %v241_v19 }
  0x2c   : > { %288 = vmatpush.msra.mxu1 %v240_v22 }
  0x2d   : > { %304 = vperm.xlu0 %418, %v301_v18   ;;  %268 = vmatpush.msra.mxu0 %v239_v21 }
  0x2e   : > { %386 = vmatmul.msk.f32.vlgmr.msra.gmra.mxu0 %vm249_vm0, %v238_v23  ;;  %387 = vmatmul.msk.f32.vlgmr.msra.gmra.mxu1 %vm249_vm0, %v238_v23 }
  0x97   : > { %v297_v24 = vpop.permute.xlu0 %296 }
  0x9f   : > { %v305_v29 = vpop.permute.xlu0 %304 }
  0xab   : > { %v270_v25 = vpop.f32.mrf.mxu0  ;;  %v290_v26 = vpop.f32.mrf.mxu1 }
  0xac   : > { %v299_v27 = vmul.f32 %v297_v24, %v270_v25  ;;  %v300_v28 = vmul.f32 %v297_v24, %v290_v26 }
  0xae   : > { %v307_v30 = vadd.f32 %v305_v29, %v299_v27  ;;  %v308_v31 = vadd.f32 %v305_v29, %v300_v28 }
  0xb0   : > { %v309_v32 = vmul.f32 0.01, %v307_v30  ;;  %v310_v33 = vmul.f32 0.01, %v308_v31 }
  0xb2   : > { %v311_v34 = vmax.f32 %v307_v30, %v309_v32  ;;  %v312_v35 = vmax.f32 %v308_v31, %v310_v33 }
  0xb4   : > { %313 = vst [vmem:[%s236_s21] sm:$0xff] %v311_v34 }
  0xb5   : > { %314 = vst [vmem:[%s236_s21 + $0x8] sm:$0xff] %v312_v35 }
  0xb6 PF: > { %p11_p9 = scmp.ge.s32.totalorder %s486_s19, 4   ;;  %s535_s15 = smov %s437_s16 }
  0xb7   : > { %s536_s16 = smov %s495_s22  ;;  %s537_s17 = smov %s486_s19 }
  0xb8   :  { %13 = sbr.rel (!%p11_p9) target bundleno = 2 (0x2), region = 94 }

// kernel: down_block_forward.5
= control target key start
LH: loop header
LB: loop body
LE: loop exit
PB: predicated region body
PF: predicated region fallthrough
CT: control target
= control target key end

     0   :  { %s493_s15 = smov 0   ;;  %s495_s16 = smov 0   ;;  %s614_s0 = inlined_call_operand.vmem [shape: f32[72,512], index: 0, kind: input, shape index: {}]   ;;  %s615_s1 = inlined_call_operand.vmem [shape: f32[8,72], index: 1, kind: input, shape index: {}]   ;;  %s616_s2 = inlined_call_operand.vmem [shape: f32[8,1], index: 2, kind: input, shape index: {}]   ;;  %s617_s3 = inlined_call_operand.vmem [shape: f32[8,1], index: 3, kind: input, shape index: {}]   ;;  %s618_s4 = inlined_call_operand.vmem [shape: f32[8,512], index: 4, kind: output, shape index: {}]  }
   0x1   :  { %s497_s17 = smov 0  }
   0x2 LB: > { %s401_s18 = sadd.s32 4294967295, %s465_s17   ;;  %s510_s19 = sadd.s32 1, %s465_s17   ;;  %s465_s17 = sphi %s497_s17, %s621_s17   ;;  %s461_s16 = sphi %s495_s16, %s620_s16   ;;  %s457_s15 = sphi %s493_s15, %s619_s15  }
   0x3   : > { %s18_s20 = ssub.s32 %s465_s17, %s510_s19  ;;  %s21_s21 = sadd.s32 1, %s461_s16 }
   0x4   : > { %p19_p0 = scmp.eq.s32.totalorder %s18_s20, 0  ;;  %p28_p1 = scmp.ne.s32.totalorder %s461_s16, %s457_s15 }
   0x5   : > { %p29_p2 = scmp.eq.s32.totalorder %s465_s17, 0  ;;  %p404_p4 = scmp.ge.s32.totalorder %s465_s17, 2 }
   0x6   : > { %s519_s22 = scalar_select %p19_p0, %s461_s16, %s21_s21  }
   0x7   : > { %p30_p3 = por %p29_p2, %p28_p1  ;;  %152 = sbr.rel (%p404_p4) target bundleno = 34 (0x22), region = 28 }
   0xc   : > { %155 = sbr.rel (!%p30_p3) target bundleno = 34 (0x22), region = 32  ;;  %s157_s23 = sand.u32 (%p30_p3), 1, %s461_s16  }
   0xd   : > { %s414_s24 = sshll.u32 (%p30_p3), %s465_s17, 4  ;;  %s415_s25 = smul.u32 (%p30_p3), 144, %s157_s23 }
   0xe   : > { %s527_s28 = scalar_lea.vmem (%p30_p3), %s614_s0, %s414_s24 }
   0xf   : > { %v175_v0 = vld [vmem:[%s527_s28] sm:$0xff] (%p30_p3)  ;;  %v177_v1 = vld [vmem:[%s527_s28 + $0x8] sm:$0xff] (%p30_p3)  ;;  %s532_s29 = scalar_lea.vmem (%p30_p3), [#allocation2], %s415_s25 }
  0x10   : > { %v179_v2 = vld [vmem:[%s527_s28 + $0x20] sm:$0xff] (%p30_p3)  ;;  %176 = vst [vmem:[%s532_s29] sm:$0xff] (%p30_p3), %v175_v0  ;;  %v181_v3 = vld [vmem:[%s527_s28 + $0x28] sm:$0xff] (%p30_p3) }
  0x11   : > { %178 = vst [vmem:[%s532_s29 + $0x8] sm:$0xff] %v177_v1  ;;  %v183_v4 = vld [vmem:[%s527_s28 + $0x40] sm:$0xff]  ;;  %v185_v5 = vld [vmem:[%s527_s28 + $0x48] sm:$0xff] }
  0x12   : > { %180 = vst [vmem:[%s532_s29 + $0x10] sm:$0xff] %v179_v2  ;;  %v187_v6 = vld [vmem:[%s527_s28 + $0x60] sm:$0xff]  ;;  %v189_v7 = vld [vmem:[%s527_s28 + $0x68] sm:$0xff] }
  0x13   : > { %182 = vst [vmem:[%s532_s29 + $0x18] sm:$0xff] %v181_v3  ;;  %v191_v8 = vld [vmem:[%s527_s28 + $0x80] sm:$0xff]  ;;  %v193_v9 = vld [vmem:[%s527_s28 + $0x88] sm:$0xff] }
  0x14   : > { %184 = vst [vmem:[%s532_s29 + $0x20] sm:$0xff] %v183_v4  ;;  %v195_v10 = vld [vmem:[%s527_s28 + $0xa0] sm:$0xff]  ;;  %v197_v11 = vld [vmem:[%s527_s28 + $0xa8] sm:$0xff] }
  0x15   : > { %186 = vst [vmem:[%s532_s29 + $0x28] sm:$0xff] %v185_v5  ;;  %v199_v12 = vld [vmem:[%s527_s28 + $0xc0] sm:$0xff]  ;;  %v201_v13 = vld [vmem:[%s527_s28 + $0xc8] sm:$0xff] }
  0x16   : > { %188 = vst [vmem:[%s532_s29 + $0x30] sm:$0xff] %v187_v6  ;;  %v203_v14 = vld [vmem:[%s527_s28 + $0xe0] sm:$0xff]  ;;  %v205_v15 = vld [vmem:[%s527_s28 + $0xe8] sm:$0xff] }
  0x17   : > { %190 = vst [vmem:[%s532_s29 + $0x38] sm:$0xff] %v189_v7  ;;  %v207_v16 = vld [vmem:[%s527_s28 + $0x100] sm:$0xff]  ;;  %v209_v17 = vld [vmem:[%s527_s28 + $0x108] sm:$0xff] }
  0x18   : > { %192 = vst [vmem:[%s532_s29 + $0x40] sm:$0xff] %v191_v8 }
  0x19   : > { %194 = vst [vmem:[%s532_s29 + $0x48] sm:$0xff] %v193_v9 }
  0x1a   : > { %196 = vst [vmem:[%s532_s29 + $0x50] sm:$0xff] %v195_v10 }
  0x1b   : > { %198 = vst [vmem:[%s532_s29 + $0x58] sm:$0xff] %v197_v11 }
  0x1c   : > { %200 = vst [vmem:[%s532_s29 + $0x60] sm:$0xff] %v199_v12 }
  0x1d   : > { %202 = vst [vmem:[%s532_s29 + $0x68] sm:$0xff] %v201_v13 }
  0x1e   : > { %204 = vst [vmem:[%s532_s29 + $0x70] sm:$0xff] %v203_v14 }
  0x1f   : > { %206 = vst [vmem:[%s532_s29 + $0x78] sm:$0xff] %v205_v15 }
  0x20   : > { %208 = vst [vmem:[%s532_s29 + $0x80] sm:$0xff] %v207_v16 }
  0x21   : > { %210 = vst [vmem:[%s532_s29 + $0x88] sm:$0xff] %v209_v17 }
  0x22 PF: > { %p407_p5 = scmp.ge.s32.totalorder %s465_s17, 1  ;;  %p215_p6 = scmp.lt.s32.totalorder %s465_s17, 3 }
  0x24   : > { %p216_p7 = pnand %p407_p5, %p215_p6 }
  0x25   : > { %s222_s30 = sand.u32 (!%p216_p7), 1, %s457_s15   ;;  %s408_s13 = sshll.u32 (!%p216_p7), %s401_s18, 1 }
  0x26   : > { %219 = sbr.rel (%p216_p7) target bundleno = 197 (0xc5), region = 55  ;;  %p249_p8 = scmp.lt.s32.totalorder (!%p216_p7), %s408_s13, 3 }
  0x27   : > { %s416_s7 = smul.u32 (!%p216_p7), 144, %s222_s30 }
  0x29   : > { %s573_s8 = scalar_lea.vmem (!%p216_p7), [#allocation2], %s416_s7 }
  0x2b   : > { %v317_v18 = vld [vmem:[%s616_s2] sm:$0xff]  ;;  %v467_v19 = vmov 0   ;;  %v272_v21 = vld [vmem:[%s573_s8 + $0x88] sm:$0xff]  ;;  %v270_v23 = vld [vmem:[%s573_s8 + $0x78] sm:$0xff]  ;;  %vm273_vm0 = vcmask 588800   ;;  %s623_s13 = smov (!%p249_p8, %s408_s13), 3 }
  0x2c   : > { %442 = vset.pattern.permute.xlu0 %v467_v19  ;;  %v271_v20 = vld [vmem:[%s573_s8 + $0x80] sm:$0xff]  ;;  %v269_v22 = vld [vmem:[%s573_s8 + $0x70] sm:$0xff]  ;;  %304 = vmatpush.msra.mxu1 %v272_v21  ;;  %v268_v25 = vld [vmem:[%s573_s8 + $0x68] sm:$0xff]  ;;  %s409_s14 = sshll.u32 %s623_s13, 3 }
  0x2d   : > { %320 = vperm.xlu0 %442, %v317_v18   ;;  %284 = vmatpush.msra.mxu0 %v271_v20  ;;  %v267_v24 = vld [vmem:[%s573_s8 + $0x60] sm:$0xff]  ;;  %v265_v27 = vld [vmem:[%s573_s8 + $0x50] sm:$0xff]  ;;  %v266_v28 = vld [vmem:[%s573_s8 + $0x58] sm:$0xff]  ;;  %s252_s21 = scalar_lea.vmem %s618_s4, %s409_s14 }
  0x2e   : > { %305 = vmatpush.msra.mxu1 %v270_v23  ;;  %v325_v26 = vld [vmem:[%s617_s3] sm:$0xff]  ;;  %v264_v30 = vld [vmem:[%s573_s8 + $0x48] sm:$0xff]  ;;  %v262_v32 = vld [vmem:[%s573_s8 + $0x38] sm:$0xff] }
  0x2f   : > { %285 = vmatpush.msra.mxu0 %v269_v22  ;;  %v263_v29 = vld [vmem:[%s573_s8 + $0x40] sm:$0xff]  ;;  %v261_v31 = vld [vmem:[%s573_s8 + $0x30] sm:$0xff]  ;;  %v260_v34 = vld [vmem:[%s573_s8 + $0x28] sm:$0xff] }
  0x30   : > { %306 = vmatpush.msra.mxu1 %v268_v25  ;;  %v259_v33 = vld [vmem:[%s573_s8 + $0x20] sm:$0xff]  ;;  %v257_v35 = vld [vmem:[%s573_s8 + $0x10] sm:$0xff]  ;;  %v258_v36 = vld [vmem:[%s573_s8 + $0x18] sm:$0xff] }
  0x31   : > { %286 = vmatpush.msra.mxu0 %v267_v24  ;;  %v255_v37 = vld [vmem:[%s573_s8] sm:$0xff]  ;;  %v256_v38 = vld [vmem:[%s573_s8 + $0x8] sm:$0xff] }
  0x32   : > { %307 = vmatpush.msra.mxu1 %v266_v28  ;;  %v254_v39 = vld [vmem:[%s615_s1] sm:$0xff] }
  0x33   : > { %287 = vmatpush.msra.mxu0 %v265_v27 }
  0x34   : > { %308 = vmatpush.msra.mxu1 %v264_v30 }
  0x35   : > { %328 = vperm.xlu0 %442, %v325_v26   ;;  %288 = vmatpush.msra.mxu0 %v263_v29 }
  0x36   : > { %309 = vmatpush.msra.mxu1 %v262_v32 }
  0x37   : > { %289 = vmatpush.msra.mxu0 %v261_v31 }
  0x38   : > { %310 = vmatpush.msra.mxu1 %v260_v34 }
  0x39   : > { %290 = vmatpush.msra.mxu0 %v259_v33 }
  0x3a   : > { %311 = vmatpush.msra.mxu1 %v258_v36 }
  0x3b   : > { %291 = vmatpush.msra.mxu0 %v257_v35 }
  0x3c   : > { %312 = vmatpush.msra.mxu1 %v256_v38 }
  0x3d   : > { %292 = vmatpush.msra.mxu0 %v255_v37  ;;  %411 = vmatmul.msk.f32.vlgmr.msra.gmra.mxu1 %vm273_vm0, %v254_v39 }
  0x3e   : > { %410 = vmatmul.msk.f32.vlgmr.msra.gmra.mxu0 %vm273_vm0, %v254_v39 }
  0x9f   : > { %v321_v40 = vpop.permute.xlu0 %320 }
  0xa7   : > { %v329_v45 = vpop.permute.xlu0 %328 }
  0xba   : > { %v314_v42 = vpop.f32.mrf.mxu1 }
  0xbb   : > { %v294_v41 = vpop.f32.mrf.mxu0  ;;  %v324_v44 = vmul.f32 %v321_v40, %v314_v42 }
  0xbc   : > { %v323_v43 = vmul.f32 %v321_v40, %v294_v41 }
  0xbd   : > { %v332_v47 = vadd.f32 %v329_v45, %v324_v44 }
  0xbe   : > { %v331_v46 = vadd.f32 %v329_v45, %v323_v43 }
  0xbf   : > { %v334_v49 = vmul.f32 0.01, %v332_v47 }
  0xc0   : > { %v333_v48 = vmul.f32 0.01, %v331_v46 }
  0xc1   : > { %v336_v51 = vmax.f32 %v332_v47, %v334_v49 }
  0xc2   : > { %v335_v50 = vmax.f32 %v331_v46, %v333_v48 }
  0xc3   : > { %338 = vst [vmem:[%s252_s21 + $0x8] sm:$0xff] %v336_v51 }
  0xc4   : > { %337 = vst [vmem:[%s252_s21] sm:$0xff] %v335_v50 }
  0xc5 PF: > { %p11_p9 = scmp.ge.s32.totalorder %s510_s19, 4   ;;  %s619_s15 = smov %s461_s16 }
  0xc6   : > { %s620_s16 = smov %s519_s22  ;;  %s621_s17 = smov %s510_s19 }
  0xc7   :  { %13 = sbr.rel (!%p11_p9) target bundleno = 2 (0x2), region = 94 }

</bundles_post_ra>
